<compile_context>
chip_gen: v5e
topology: v5e:2x2
jax: 0.10.0
libtpu: 0.0.40
codegen_flags: <defaults>
</compile_context>

<pallas_src>
import jax
import jax.numpy as jnp
from jax.experimental import pallas as pl
from jax.experimental.pallas import tpu as pltpu

_LANE = 1024                            # lane-dense slab width (multiple of 128)
_TARGET_BLOCK_BYTES = 4 * 1024 * 1024   # ~4 MiB per block per buffer


def _round_up(a, b):
    return ((a + b - 1) // b) * b


def _relu6_kernel(x_ref, o_ref):
    x = x_ref[...]
    # clamp(x, 0, 6) — two VPU ops per vreg; nowhere near the bottleneck.
    o_ref[...] = jnp.minimum(jnp.maximum(x, jnp.zeros((), x.dtype)),
                             jnp.asarray(6, x.dtype))


def relu6_pallas(x):
    """Elementwise ReLU6 with PyTorch semantics: clamp(x, min=0, max=6)."""
    orig_shape = x.shape
    dtype = x.dtype
    n = x.size
    if n == 0:
        return x

    itemsize = jnp.dtype(dtype).itemsize
    # Packed sub-32-bit dtypes need taller sublane tiles: (8,128) f32,
    # (16,128) bf16/f16, (32,128) int8/fp8.
    sublane = {4: 8, 2: 16, 1: 32}.get(itemsize, 8)
    # Keep each block ~4 MiB in bytes regardless of dtype.
    target_rows = max(sublane, _TARGET_BLOCK_BYTES // (_LANE * itemsize))

    # Fast path: exact multiple of the lane width -> no pad copy, no slice.
    if n % _LANE == 0:
        rows = n // _LANE
        x2d = x.reshape(rows, _LANE)
        padded = False
    else:
        rows = pl.cdiv(n, _LANE)
        pad = rows * _LANE - n          # pad only to the next multiple of _LANE
        x2d = jnp.pad(x.reshape(-1), (0, pad)).reshape(rows, _LANE)
        padded = True

    if rows <= sublane:
        # Tiny input: single full-array block (block shape == array dims
        # satisfies the (8,128) tiling rule for any dtype).
        block_rows = rows
    else:
        # Sublane-aligned block, capped at ~4 MiB; aim for >= 2 grid steps so
        # the "parallel" axis actually splits across v7x's two TensorCores.
        block_rows = min(target_rows, _round_up(pl.cdiv(rows, 2), sublane))
    num_blocks = pl.cdiv(rows, block_rows)   # partial last block is masked

    out2d = pl.pallas_call(
        _relu6_kernel,
        out_shape=jax.ShapeDtypeStruct((rows, _LANE), dtype),
        grid=(num_blocks,),
        in_specs=[pl.BlockSpec((block_rows, _LANE), lambda i: (i, 0))],
        out_specs=pl.BlockSpec((block_rows, _LANE), lambda i: (i, 0)),
        compiler_params=pltpu.CompilerParams(
            dimension_semantics=("parallel",),
            # 2 in + 2 out double buffers of <=4 MiB each = <=16 MiB; raise the
            # scoped limit so v5e's 16 MiB default is not a compile cliff.
            vmem_limit_bytes=32 * 1024 * 1024),
    )(x2d)

    if padded:
        return out2d.reshape(-1)[:n].reshape(orig_shape)
    return out2d.reshape(orig_shape)


if __name__ == "__main__":
    key = jax.random.PRNGKey(0)
    k0, k1 = jax.random.split(key)

    # Shape consistent with the module's usage: (N=2, C=4, H=16, W=16).
    # 2048 elements -> exact multiple of 1024 -> zero-copy fast path.
    x = jax.random.normal(k0, (2, 4, 16, 16), jnp.float32) * 4.0  # spans <0 and >6
    out = jax.block_until_ready(relu6_pallas(x))
    ref = jnp.clip(x, 0.0, 6.0)
    assert out.shape == x.shape, out.shape
    assert out.dtype == x.dtype, out.dtype
    assert jnp.array_equal(out, ref), float(jnp.max(jnp.abs(out - ref)))

    # Ragged size (not a multiple of 1024) exercises the padded fallback path.
    x2 = jax.random.normal(k1, (2, 4, 16, 17), jnp.float32) * 4.0
    out2 = jax.block_until_ready(relu6_pallas(x2))
    ref2 = jnp.clip(x2, 0.0, 6.0)
    assert out2.shape == x2.shape and jnp.array_equal(out2, ref2)

    print("KERNEL_OK")
</pallas_src>

<mosaic_0001>
module attributes {stable_mosaic.version = 11 : i64} {
  func.func @_relu6_kernel(%arg0: i32, %arg1: memref<2x1024xf32, #tpu.memory_space<vmem>>, %arg2: memref<2x1024xf32, #tpu.memory_space<vmem>>) attributes {dimension_semantics = [#tpu.dimension_semantics<parallel>], iteration_bounds = array<i64: 1>, scalar_prefetch = 0 : i64, scratch_operands = 0 : i64, tpu.core_type = #tpu.core_type<tc>, window_params = [{transform_indices = @transform_0, window_bounds = array<i64: 2, 1024>}, {transform_indices = @transform_1, window_bounds = array<i64: 2, 1024>}]} {
    %c0 = arith.constant 0 : index
    %c0_0 = arith.constant 0 : index
    %0 = vector.load %arg1[%c0, %c0_0] : memref<2x1024xf32, #tpu.memory_space<vmem>>, vector<2x1024xf32>
    %cst = arith.constant 0.000000e+00 : f32
    %1 = vector.broadcast %cst : f32 to vector<2x1024xf32>
    %2 = arith.maximumf %0, %1 : vector<2x1024xf32>
    %cst_1 = arith.constant 6.000000e+00 : f32
    %3 = vector.broadcast %cst_1 : f32 to vector<2x1024xf32>
    %4 = arith.minimumf %2, %3 : vector<2x1024xf32>
    %c0_2 = arith.constant 0 : index
    %c0_3 = arith.constant 0 : index
    %5 = vector.load %arg2[%c0_2, %c0_3] : memref<2x1024xf32, #tpu.memory_space<vmem>>, vector<2x1024xf32>
    tpu.vector_store %arg2[%c0_2, %c0_3], %4 {strides = array<i32>} : memref<2x1024xf32, #tpu.memory_space<vmem>>, vector<2x1024xf32>,
    return
  }
  func.func @transform_0(%arg0: i32) -> (i32, i32) {
    %c0_i32 = arith.constant 0 : i32
    %c0_i32_0 = arith.constant 0 : i32
    return %arg0, %c0_i32 : i32, i32
  }
  func.func @transform_1(%arg0: i32) -> (i32, i32) {
    %c0_i32 = arith.constant 0 : i32
    %c0_i32_0 = arith.constant 0 : i32
    return %arg0, %c0_i32 : i32, i32
  }
}

</mosaic_0001>

<bundles_post_ra>
// kernel: tpu_custom_call.1
= control target key start
LH: loop header
LB: loop body
LE: loop exit
PB: predicated region body
PF: predicated region fallthrough
CT: control target
= control target key end

     0   :  { %6 = vsyncpa [#allocation3], 0  ;;  %s120_s0 = inlined_call_operand.hbm [shape: f32[2,1024], index: 0, kind: input, shape index: {}]   ;;  %s121_s1 = inlined_call_operand.hbm [shape: f32[2,1024], index: 1, kind: output, shape index: {}]  }
   0x1   :  { %7 = vsyncpa [#allocation4], 0  ;;  %s13_s8 = sshll.u32 %s120_s0, 4  ;;  %s102_s9 = smov [#allocation2]   ;;  %s14_s8 = int_to_ptr.hbm [resolvable:$true] %s13_s8 }
   0x2   :  { %s15_s10 = sshll.u32 %s102_s9, 4  ;;  %s16_s10 = int_to_ptr.vmem [resolvable:$true] %s15_s10 }
   0x3   :  { %18 = dma.hbm_to_vmem [thread:$0]  %s14_s8, 256, %s16_s10, [#allocation3]  }
   0x4   :  { %98 = dma.done.wait [#allocation3], 256  }
   0x5   :  { %99 = vsyncadd [#allocation3], 4294967040  ;;  %v23_v0 = vld [vmem:[#allocation2] sm:$0xff]  ;;  %v24_v1 = vld [vmem:[#allocation2 + $0x8] sm:$0xff]  ;;  %s103_s11 = smov [#allocation5]   ;;  %s38_s15 = sshll.u32 %s121_s1, 4  ;;  %s39_s15 = int_to_ptr.hbm [resolvable:$true] %s38_s15 }
   0x6   :  { %v25_v2 = vmax.f32 %v23_v0, 0.0  ;;  %v26_v3 = vmax.f32 %v24_v1, 0.0  ;;  %s36_s12 = sshll.u32 %s103_s11, 4  ;;  %s37_s12 = int_to_ptr.vmem [resolvable:$true] %s36_s12 }
   0x8   :  { %v27_v4 = vmin.f32 %v25_v2, 6.0  ;;  %v28_v5 = vmin.f32 %v26_v3, 6.0 }
   0xa   :  { %29 = vst [vmem:[#allocation5] sm:$0xff] %v27_v4 }
   0xb   :  { %30 = vst [vmem:[#allocation5 + $0x8] sm:$0xff] %v28_v5 }
   0xc   :  { %41 = dma.vmem_to_hbm [thread:$0]  %s37_s12, 256, %s39_s15, [#allocation4]  }
   0xd   :  { %100 = dma.done.wait [#allocation4], 256  }
   0xe   :  { %101 = vsyncadd [#allocation4], 4294967040 }
   0xf   :  { %46 = vsyncpa [#allocation3], 1 }
  0x10   :  { %47 = vsyncpa [#allocation4], 1 }

</bundles_post_ra>
